<compile_context>
chip_gen: v5e
topology: v5e:2x2
jax: 0.10.0
libtpu: 0.0.40
codegen_flags: <defaults>
</compile_context>

<pallas_src>
import functools
import math

import jax
import jax.numpy as jnp
from jax.experimental import pallas as pl
from jax.experimental.pallas import tpu as pltpu


def _round_up(x: int, m: int) -> int:
    return (x + m - 1) // m * m


def _head_kernel(x_ref, w_ref, b_ref, o_ref, *, log: bool):
    # x_ref : (tm, D)    VMEM tile of rows (native dtype)
    # w_ref : (D, Cp)    full (padded) weight, VMEM-resident across the grid
    # b_ref : (1, Cp)    bias row (padded classes hold -1e30)
    # o_ref : (tm, Cp)   output probabilities / log-probabilities
    #
    # Native-dtype operands into the MXU; accumulate in f32.
    logits = jnp.dot(x_ref[...], w_ref[...], preferred_element_type=jnp.float32)
    logits = logits + b_ref[...].astype(jnp.float32)

    # Numerically-stable (log_)softmax over the last dim, f32 math.
    m = jnp.max(logits, axis=-1, keepdims=True)
    shifted = logits - m
    e = jnp.exp(shifted)
    s = jnp.sum(e, axis=-1, keepdims=True)
    if log:
        out = shifted - jnp.log(s)
    else:
        # Exact f32 division: keeps row sums == 1 to f32 precision (the approx
        # EUP reciprocal skewed whole rows by its relative error).
        out = e / s
    o_ref[...] = out.astype(o_ref.dtype)


def pointwise_classification_head(x, w, b, *, log: bool = False, tm: int = 512):
    """x: (B, S, in_dim); w: (in_dim, classes); b: (classes,). Returns (B, S, classes)."""
    B, S, D = x.shape
    C = w.shape[1]
    M = B * S

    # --- lane-dense class dimension: pad C up to a multiple of 128 --------------
    Cp = _round_up(C, 128)
    if Cp != C:
        w = jnp.pad(w, ((0, 0), (0, Cp - C)))
        # Huge negative bias on padded classes -> exp(.) underflows to 0, so the
        # softmax over the real classes is unchanged.
        b = jnp.concatenate(
            [b, jnp.full((Cp - C,), -1e30, dtype=b.dtype)]
        )

    # --- row tiling: big tile for throughput, but don't over-pad tiny inputs ----
    tm_eff = min(tm, _round_up(M, 8))
    Mp = _round_up(M, tm_eff)

    xf = x.reshape(M, D)
    if Mp != M:
        xf = jnp.pad(xf, ((0, Mp - M), (0, 0)))
    b2 = b.reshape(1, Cp)

    out_dtype = x.dtype
    grid = (Mp // tm_eff,)

    # VMEM budget: double-buffered x/out tiles + resident weight/bias (counted
    # double-buffered to be conservative), plus headroom.  Capped at 64 MiB so it
    # stays legal on v7x; defaults to >= 32 MiB (the v6e/v7x scoped default).
    vmem_need = (
        2 * tm_eff * (D * xf.dtype.itemsize + Cp * jnp.dtype(out_dtype).itemsize)
        + 2 * (D + 1) * Cp * w.dtype.itemsize
    )
    vmem_limit = int(min(max(2 * vmem_need + (4 << 20), 32 << 20), 64 << 20))

    out = pl.pallas_call(
        functools.partial(_head_kernel, log=log),
        out_shape=jax.ShapeDtypeStruct((Mp, Cp), out_dtype),
        grid_spec=pltpu.PrefetchScalarGridSpec(
            num_scalar_prefetch=0,
            grid=grid,
            in_specs=[
                pl.BlockSpec((tm_eff, D), lambda i: (i, 0)),   # row tile of activations
                pl.BlockSpec((D, Cp), lambda i: (0, 0)),       # full (padded) weight, resident
                pl.BlockSpec((1, Cp), lambda i: (0, 0)),       # bias row, resident
            ],
            out_specs=pl.BlockSpec((tm_eff, Cp), lambda i: (i, 0)),
        ),
        compiler_params=pltpu.CompilerParams(
            dimension_semantics=("parallel",),   # row axis shards across TCs (v7x)
            vmem_limit_bytes=vmem_limit,
        ),
    )(xf, w, b2)

    # Strip row / class padding.
    return out[:M, :C].reshape(B, S, C)


if __name__ == "__main__":
    # Small shapes implied by the head: backbone output (B, S, in_dim) -> (B, S, classes)
    B, S, in_dim, classes = 2, 8, 32, 16

    key = jax.random.PRNGKey(0)
    kx, kw, kb = jax.random.split(key, 3)

    # Backbone output (identity backbone)
    x = jax.random.normal(kx, (B, S, in_dim), dtype=jnp.float32)

    # Deterministic nn.Linear-style init: U(-1/sqrt(in_dim), 1/sqrt(in_dim))
    bound = 1.0 / math.sqrt(in_dim)
    w = jax.random.uniform(kw, (in_dim, classes), jnp.float32, -bound, bound)
    b = jax.random.uniform(kb, (classes,), jnp.float32, -bound, bound)

    # softmax branch
    probs = pointwise_classification_head(x, w, b, log=False)
    probs = jax.block_until_ready(probs)

    # log_softmax branch
    logp = pointwise_classification_head(x, w, b, log=True)
    logp = jax.block_until_ready(logp)

    # reference check in plain JAX
    logits_ref = x @ w + b
    probs_ref = jax.nn.softmax(logits_ref, axis=-1)
    logp_ref = jax.nn.log_softmax(logits_ref, axis=-1)
    assert jnp.allclose(probs, probs_ref, atol=1e-5, rtol=1e-5)
    assert jnp.allclose(logp, logp_ref, atol=1e-5, rtol=1e-5)
    # Rows must sum to ~1 (exact division, so this is tight now).
    assert jnp.allclose(jnp.sum(probs, axis=-1), 1.0, atol=1e-5)

    print("KERNEL_OK")
</pallas_src>

<mosaic_0001>
module attributes {stable_mosaic.version = 11 : i64} {
  func.func @_head_kernel(%arg0: i32, %arg1: memref<16x32xf32, #tpu.memory_space<vmem>>, %arg2: memref<32x128xf32, #tpu.memory_space<vmem>>, %arg3: memref<1x128xf32, #tpu.memory_space<vmem>>, %arg4: memref<16x128xf32, #tpu.memory_space<vmem>>) attributes {dimension_semantics = [#tpu.dimension_semantics<parallel>], iteration_bounds = array<i64: 1>, scalar_prefetch = 0 : i64, scratch_operands = 0 : i64, tpu.core_type = #tpu.core_type<tc>, window_params = [{transform_indices = @transform_0, window_bounds = array<i64: 16, 32>}, {pipeline_mode = #tpu.pipeline_mode<synchronous>, transform_indices = @transform_1, window_bounds = array<i64: 32, 128>}, {pipeline_mode = #tpu.pipeline_mode<synchronous>, transform_indices = @transform_2, window_bounds = array<i64: 1, 128>}, {transform_indices = @transform_3, window_bounds = array<i64: 16, 128>}]} {
    %c0 = arith.constant 0 : index
    %c0_0 = arith.constant 0 : index
    %0 = vector.load %arg1[%c0, %c0_0] : memref<16x32xf32, #tpu.memory_space<vmem>>, vector<16x32xf32>
    %c0_1 = arith.constant 0 : index
    %c0_2 = arith.constant 0 : index
    %1 = vector.load %arg2[%c0_1, %c0_2] : memref<32x128xf32, #tpu.memory_space<vmem>>, vector<32x128xf32>
    %cst = arith.constant dense<0.000000e+00> : vector<16x128xf32>
    %2 = tpu.matmul %0, %1, %cst {dimension_numbers = #tpu.dot_dimension_numbers<[1], [0], [0], [1], [0, 0, 1, 1], [], []>} : vector<16x32xf32>, vector<32x128xf32>, vector<16x128xf32> -> vector<16x128xf32>
    %c0_3 = arith.constant 0 : index
    %c0_4 = arith.constant 0 : index
    %3 = vector.load %arg3[%c0_3, %c0_4] : memref<1x128xf32, #tpu.memory_space<vmem>>, vector<1x128xf32>
    %4 = vector.broadcast %3 : vector<1x128xf32> to vector<16x128xf32>
    %5 = arith.addf %2, %4 : vector<16x128xf32>
    %cst_5 = arith.constant dense<0xFF800000> : vector<16xf32>
    %6 = vector.multi_reduction <maximumf>, %5, %cst_5 [1] : vector<16x128xf32> to vector<16xf32>
    %7 = vector.shape_cast %6 : vector<16xf32> to vector<16x1xf32>
    %8 = vector.broadcast %7 : vector<16x1xf32> to vector<16x128xf32>
    %9 = arith.subf %5, %8 : vector<16x128xf32>
    %10 = math.exp %9 : vector<16x128xf32>
    %cst_6 = arith.constant dense<0.000000e+00> : vector<16xf32>
    %11 = vector.multi_reduction <add>, %10, %cst_6 [1] : vector<16x128xf32> to vector<16xf32>
    %12 = vector.shape_cast %11 : vector<16xf32> to vector<16x1xf32>
    %13 = vector.broadcast %12 : vector<16x1xf32> to vector<16x128xf32>
    %14 = arith.divf %10, %13 : vector<16x128xf32>
    %c0_7 = arith.constant 0 : index
    %c0_8 = arith.constant 0 : index
    %15 = vector.load %arg4[%c0_7, %c0_8] : memref<16x128xf32, #tpu.memory_space<vmem>>, vector<16x128xf32>
    tpu.vector_store %arg4[%c0_7, %c0_8], %14 {strides = array<i32>} : memref<16x128xf32, #tpu.memory_space<vmem>>, vector<16x128xf32>,
    return
  }
  func.func @transform_0(%arg0: i32) -> (i32, i32) {
    %c0_i32 = arith.constant 0 : i32
    %c0_i32_0 = arith.constant 0 : i32
    return %arg0, %c0_i32 : i32, i32
  }
  func.func @transform_1(%arg0: i32) -> (i32, i32) {
    %c0_i32 = arith.constant 0 : i32
    %c0_i32_0 = arith.constant 0 : i32
    %c0_i32_1 = arith.constant 0 : i32
    return %c0_i32, %c0_i32_0 : i32, i32
  }
  func.func @transform_2(%arg0: i32) -> (i32, i32) {
    %c0_i32 = arith.constant 0 : i32
    %c0_i32_0 = arith.constant 0 : i32
    %c0_i32_1 = arith.constant 0 : i32
    return %c0_i32, %c0_i32_0 : i32, i32
  }
  func.func @transform_3(%arg0: i32) -> (i32, i32) {
    %c0_i32 = arith.constant 0 : i32
    %c0_i32_0 = arith.constant 0 : i32
    return %arg0, %c0_i32 : i32, i32
  }
}

</mosaic_0001>

<bundles_post_ra>
// kernel: tpu_custom_call.1
= control target key start
LH: loop header
LB: loop body
LE: loop exit
PB: predicated region body
PF: predicated region fallthrough
CT: control target
= control target key end

     0   :  { %8 = vsyncpa [#allocation3], 0  ;;  %s297_s0 = inlined_call_operand.hbm [shape: f32[16,32], index: 0, kind: input, shape index: {}]   ;;  %s298_s1 = inlined_call_operand.hbm [shape: f32[32,128], index: 1, kind: input, shape index: {}]   ;;  %s299_s2 = inlined_call_operand.vmem [shape: f32[1,128], index: 2, kind: input, shape index: {}]   ;;  %s300_s3 = inlined_call_operand.hbm [shape: f32[16,128], index: 3, kind: output, shape index: {}]  }
   0x1   :  { %9 = vsyncpa [#allocation6], 0 }
   0x2   :  { %10 = vsyncpa [#allocation4], 0  ;;  %s15_s14 = sshll.u32 %s297_s0, 4  ;;  %s251_s15 = smov [#allocation2]   ;;  %s16_s14 = int_to_ptr.hbm [resolvable:$true] %s15_s14 }
   0x3   :  { %s17_s16 = sshll.u32 %s251_s15, 4  ;;  %s28_s19 = sshll.u32 %s298_s1, 4  ;;  %s18_s16 = int_to_ptr.vmem [resolvable:$true] %s17_s16  ;;  %s29_s19 = int_to_ptr.hbm [resolvable:$true] %s28_s19 }
   0x4   :  { %s252_s20 = smov 128   ;;  %s253_s21 = smov 8  }
   0x5   :  { %23 = dma.hbm_to_vmem [thread:$0]  %s16_s14, 256, %s18_s16, [#allocation3], %s252_s20, %s252_s20, %s253_s21  }
   0x6   :  { %s254_s22 = smov [#allocation5]  }
   0x7   :  { %s30_s23 = sshll.u32 %s254_s22, 4  ;;  %s31_s23 = int_to_ptr.vmem [resolvable:$true] %s30_s23 }
   0x8   :  { %36 = dma.hbm_to_vmem [thread:$0]  %s29_s19, 512, %s31_s23, [#allocation6], %s252_s20, %s252_s20, %s253_s21  }
   0x9   :  { %245 = dma.done.wait [#allocation3], 256  }
   0xa   :  { %246 = vsyncadd [#allocation3], 4294967040 }
   0xb   :  { %247 = dma.done.wait [#allocation6], 512  }
   0xc   :  { %248 = vsyncadd [#allocation6], 4294966784  ;;  %v52_v0 = vld [vmem:[#allocation5 + $0x18] sm:$0xff]  ;;  %v51_v1 = vld [vmem:[#allocation5 + $0x10] sm:$0xff]  ;;  %vm57_vm0 = vcmask 261120   ;;  %s139_s27 = sshll.u32 %s300_s3, 4  ;;  %s140_s27 = int_to_ptr.hbm [resolvable:$true] %s139_s27 }
   0xd   :  { %76 = vmatpush.msra.mxu0 %v52_v0  ;;  %155 = vmatpush.msra.mxu1 %v52_v0  ;;  %v50_v2 = vld [vmem:[#allocation5 + $0x8] sm:$0xff]  ;;  %v49_v3 = vld [vmem:[#allocation5] sm:$0xff]  ;;  %v47_v4 = vld [vmem:[#allocation2] sm:$0xff] }
   0xe   :  { %v48_v5 = vld [vmem:[#allocation2 + $0x8] sm:$0xff]  ;;  %v164_v6 = vld [vmem:[%s299_s2] ss:$0 sm:$0xff]  ;;  %s255_s2 = smov [#allocation7]  }
   0xf   :  { %77 = vmatpush.msra.mxu0 %v51_v1  ;;  %156 = vmatpush.msra.mxu1 %v51_v1  ;;  %s137_s24 = sshll.u32 %s255_s2, 4  ;;  %s138_s24 = int_to_ptr.vmem [resolvable:$true] %s137_s24 }
  0x11   :  { %78 = vmatpush.msra.mxu0 %v50_v2  ;;  %157 = vmatpush.msra.mxu1 %v50_v2 }
  0x13   :  { %79 = vmatpush.msra.mxu0 %v49_v3  ;;  %158 = vmatpush.msra.mxu1 %v49_v3 }
  0x14   :  { %153 = vmatmul.msk.f32.vlgmr.msra.gmra.mxu0 %vm57_vm0, %v47_v4  ;;  %154 = vmatmul.msk.f32.vlgmr.msra.gmra.mxu1 %vm57_vm0, %v48_v5 }
  0x91   :  { %v81_v7 = vpop.f32.mrf.mxu0  ;;  %v84_v9 = vpop.f32.mrf.mxu1 }
  0x92   :  { %v82_v8 = vadd.f32 %v164_v6, %v81_v7  ;;  %v85_v10 = vadd.f32 %v164_v6, %v84_v9 }
  0x94   :  { %87 = vmax.xlane.f32.xlu0 %v82_v8 }
  0x9c   :  { %89 = vmax.xlane.f32.xlu0 %v85_v10 }
 0x107   :  { %v88_v11 = vpop.xlane.xlu0 %87 }
 0x108   :  { %v91_v12 = vsub.f32 %v82_v8, %v88_v11 }
 0x10a   :  { %v93_v13 = vmul.f32 1.442695, %v91_v12 }
 0x10c   :  { %165 = vpow2.f32 %v93_v13 }
 0x10f   :  { %v90_v14 = vpop.xlane.xlu0 %89 }
 0x110   :  { %v92_v15 = vsub.f32 %v85_v10, %v90_v14 }
 0x112   :  { %v166_v16 = vpop.eup %165  ;;  %v95_v17 = vmul.f32 1.442695, %v92_v15 }
 0x113   :  { %97 = vadd.xlane.f32.xlu1 %v166_v16 }
 0x114   :  { %167 = vpow2.f32 %v95_v17 }
 0x11a   :  { %v168_v18 = vpop.eup %167 }
 0x11b   :  { %99 = vadd.xlane.f32.xlu1 %v168_v18 }
 0x186   :  { %v98_v19 = vpop.xlane.xlu1 %97 }
 0x187   :  { %169 = vrcp.f32 %v98_v19  ;;  %v112_v24 = vand.u32 2147483648, %v98_v19  ;;  %v110_v26 = vand.u32 2147483647, %v98_v19  ;;  %vm106_vm2 = vweird.f32 %v98_v19 }
 0x189   :  { %v113_v29 = vor.u32 1.1754944e-38, %v112_v24  ;;  %vm111_vm4 = vcmp.eq.f32.partialorder %v110_v26, 8.507059e+37 }
 0x18d   :  { %v170_v20 = vpop.eup %169 }
 0x18e   :  { %v102_v21 = vmul.f32 %v170_v20, %v98_v19  ;;  %v100_v22 = vpop.xlane.xlu1 %99  ;;  %vm107_vm1 = vweird.f32 %v170_v20 }
 0x18f   :  { %171 = vrcp.f32 %v100_v22  ;;  %vm108_vm3 = vmor %vm106_vm2, %vm107_vm1  ;;  %v127_v35 = vand.u32 2147483648, %v100_v22  ;;  %v125_v37 = vand.u32 2147483647, %v100_v22  ;;  %vm121_vm6 = vweird.f32 %v100_v22 }
 0x190   :  { %v103_v23 = vsub.f32 1.0, %v102_v21 }
 0x191   :  { %v128_v39 = vor.u32 1.1754944e-38, %v127_v35  ;;  %vm126_vm8 = vcmp.eq.f32.partialorder %v125_v37, 8.507059e+37 }
 0x192   :  { %v104_v25 = vmul.f32 %v170_v20, %v103_v23 }
 0x194   :  { %v105_v27 = vadd.f32 %v170_v20, %v104_v25 }
 0x195   :  { %v172_v28 = vpop.eup %171 }
 0x196   :  { %v117_v30 = vmul.f32 %v172_v28, %v100_v22  ;;  %v109_v31 = vsel %vm108_vm3, %v170_v20, %v105_v27  ;;  %vm122_vm5 = vweird.f32 %v172_v28 }
 0x197   :  { %v114_v32 = vsel %vm111_vm4, %v113_v29, %v109_v31  ;;  %vm123_vm7 = vmor %vm121_vm6, %vm122_vm5 }
 0x198   :  { %v118_v33 = vsub.f32 1.0, %v117_v30  ;;  %v115_v34 = vmul.f32 %v166_v16, %v114_v32 }
 0x19a   :  { %v119_v36 = vmul.f32 %v172_v28, %v118_v33  ;;  %131 = vst [vmem:[#allocation7] sm:$0xff] %v115_v34 }
 0x19c   :  { %v120_v38 = vadd.f32 %v172_v28, %v119_v36 }
 0x19e   :  { %v124_v40 = vsel %vm123_vm7, %v172_v28, %v120_v38 }
 0x19f   :  { %v129_v41 = vsel %vm126_vm8, %v128_v39, %v124_v40 }
 0x1a0   :  { %v130_v42 = vmul.f32 %v168_v18, %v129_v41 }
 0x1a2   :  { %132 = vst [vmem:[#allocation7 + $0x8] sm:$0xff] %v130_v42 }
 0x1a3   :  { %145 = dma.vmem_to_hbm [thread:$0]  %s138_s24, 256, %s140_s27, [#allocation4], %s252_s20, %s252_s20, %s253_s21  }
 0x1a4   :  { %249 = dma.done.wait [#allocation4], 256  }
 0x1a5   :  { %250 = vsyncadd [#allocation4], 4294967040 }
 0x1a6   :  { %150 = vsyncpa [#allocation3], 1 }
 0x1a7   :  { %151 = vsyncpa [#allocation6], 1 }
 0x1a8   :  { %152 = vsyncpa [#allocation4], 1 }

</bundles_post_ra>
